<compile_context>
chip_gen: v5e
topology: v5e:2x2
jax: 0.10.0
libtpu: 0.0.40
codegen_flags: <defaults>
</compile_context>

<pallas_src>
import math
import jax
import jax.numpy as jnp
from jax.experimental import pallas as pl
from jax.experimental.pallas import tpu as pltpu

LANE = 128
SUBLANE = 8


# ----------------------------- kernel helpers -------------------------------

def _layernorm(z, gamma, beta, eps=1e-5):
    mu = jnp.mean(z, axis=-1, keepdims=True)
    var = jnp.mean((z - mu) * (z - mu), axis=-1, keepdims=True)
    return (z - mu) * jax.lax.rsqrt(var + eps) * gamma + beta


def _gelu(x):
    # tanh approximation of GELU (EUP-friendly), f32 math
    c = math.sqrt(2.0 / math.pi)
    return 0.5 * x * (1.0 + jnp.tanh(c * (x + 0.044715 * x * x * x)))


# ------------------------------ fused kernel --------------------------------

def encoder_pool_kernel(x_ref, bias_ref, pool_ref,
                        wqkv_ref, bqkv_ref, wo_ref,
                        w1_ref, b1_ref, w2_ref, vecs_ref,
                        o_ref):
    """One fused step: 1-layer transformer encoder over flattened (B*S, H)
    activations, then mean pooling via a pre-scaled selector matmul, writing a
    lane-padded (ROWS, H_pad) output slab."""
    x = x_ref[...]                                   # (BS, H) f32
    _, H = x.shape
    xb = x.astype(jnp.bfloat16)

    # --- fused QKV projection: one (BS, H) x (H, 3H) matmul ---
    qkv = jnp.dot(xb, wqkv_ref[...], preferred_element_type=jnp.float32)
    qkv = qkv + bqkv_ref[...]                        # f32 (BS, 3H)
    q = qkv[:, 0:H].astype(jnp.bfloat16)
    k = qkv[:, H:2 * H].astype(jnp.bfloat16)
    v = qkv[:, 2 * H:3 * H].astype(jnp.bfloat16)

    # --- attention scores: contract H directly (no materialized transpose) ---
    scores = jax.lax.dot_general(
        q, k, (((1,), (1,)), ((), ())),
        preferred_element_type=jnp.float32) * (1.0 / math.sqrt(H))
    # additive f32 bias: 0 where (same batch AND valid key), else -1e9
    scores = scores + bias_ref[...]

    m = jnp.max(scores, axis=-1, keepdims=True)
    e = jnp.exp(scores - m)
    attn = e * pl.reciprocal(jnp.sum(e, axis=-1, keepdims=True), approx=True)

    ctx = jnp.dot(attn.astype(jnp.bfloat16), v,
                  preferred_element_type=jnp.float32)            # (BS, H)

    vecs = vecs_ref[...]                              # (8, H) packed vectors
    bo, b2 = vecs[0:1], vecs[1:2]
    g1, be1 = vecs[2:3], vecs[3:4]
    g2, be2 = vecs[4:5], vecs[5:6]

    attn_out = jnp.dot(ctx.astype(jnp.bfloat16), wo_ref[...],
                       preferred_element_type=jnp.float32) + bo
    h = _layernorm(x + attn_out, g1, be1)

    # --- feed-forward ---
    ff = jnp.dot(h.astype(jnp.bfloat16), w1_ref[...],
                 preferred_element_type=jnp.float32) + b1_ref[...]
    ff = _gelu(ff)
    ff = jnp.dot(ff.astype(jnp.bfloat16), w2_ref[...],
                 preferred_element_type=jnp.float32) + b2
    y = _layernorm(h + ff, g2, be2)                   # (BS, H) last_hidden_state

    # --- fused mean pooling: selector already carries 1/mask_count per row ---
    pooled = jnp.dot(pool_ref[...], y, preferred_element_type=jnp.float32)  # (ROWS, H)

    rows, h_pad = o_ref.shape
    if h_pad > H:   # lane-pad so the final store is a full unmasked (ROWS, 128) slab
        pooled = jnp.concatenate(
            [pooled, jnp.zeros((rows, h_pad - H), jnp.float32)], axis=-1)
    o_ref[...] = pooled


# ------------------------------ JAX wrappers ---------------------------------

def _pack_params(params):
    """Fuse QKV weights and pack all (1, H) vectors into a single (8, H) array."""
    bf16 = jnp.bfloat16
    H = params["wo"].shape[0]
    return {
        "wqkv": jnp.concatenate([params["wq"], params["wk"], params["wv"]],
                                axis=1).astype(bf16),                    # (H, 3H)
        "bqkv": jnp.concatenate([params["bq"], params["bk"], params["bv"]],
                                axis=1),                                 # (1, 3H) f32
        "wo": params["wo"].astype(bf16),                                 # (H, H)
        "w1": params["w1"].astype(bf16),                                 # (H, F)
        "b1": params["b1"],                                              # (1, F) f32
        "w2": params["w2"].astype(bf16),                                 # (F, H)
        "vecs": jnp.concatenate(                                         # (8, H) f32
            [params["bo"], params["b2"], params["g1"], params["be1"],
             params["g2"], params["be2"], jnp.zeros((2, H), jnp.float32)], axis=0),
    }


def encoder_and_pool(x_flat, bias, pool, packed):
    BS, H = x_flat.shape
    ROWS = pool.shape[0]
    F = packed["w1"].shape[1]
    H_pad = ((H + LANE - 1) // LANE) * LANE

    def fs(shape):
        # full-array block, constant across the (single-step) grid
        return pl.BlockSpec(shape, lambda i: (0,) * len(shape))

    return pl.pallas_call(
        encoder_pool_kernel,
        out_shape=jax.ShapeDtypeStruct((ROWS, H_pad), jnp.float32),
        grid=(1,),
        in_specs=[
            fs((BS, H)),         # x (flattened activations)
            fs((BS, BS)),        # additive attention bias (block-diag + key padding)
            fs((ROWS, BS)),      # pooling selector, rows pre-scaled by 1/mask_count
            fs((H, 3 * H)),      # fused QKV weight (bf16)
            fs((1, 3 * H)),      # fused QKV bias
            fs((H, H)),          # wo (bf16)
            fs((H, F)),          # w1 (bf16)
            fs((1, F)),          # b1
            fs((F, H)),          # w2 (bf16)
            fs((8, H)),          # packed [bo, b2, g1, be1, g2, be2, 0, 0]
        ],
        out_specs=fs((ROWS, H_pad)),
        compiler_params=pltpu.CompilerParams(dimension_semantics=("arbitrary",)),
    )(x_flat, bias, pool,
      packed["wqkv"], packed["bqkv"], packed["wo"],
      packed["w1"], packed["b1"], packed["w2"], packed["vecs"])


def model_forward(input_ids, attention_mask, params):
    """Synthetic encoder + mean pooling, matching the reference forward:
       mean_pool = last_hidden_state.sum(axis=1) / attention_mask.sum(axis=1)[:, None]."""
    B, S = input_ids.shape
    H = params["emb"].shape[1]
    BS = B * S
    ROWS = ((B + SUBLANE - 1) // SUBLANE) * SUBLANE

    # glue (plain JAX): embedding lookup, batch folded into M
    x_flat = jnp.take(params["emb"], input_ids.reshape(-1), axis=0).astype(jnp.float32)
    mask_f = attention_mask.astype(jnp.float32)                          # (B, S)

    # additive attention bias (f32): 0 where (same batch AND valid key), else -1e9
    batch_id = jnp.arange(BS, dtype=jnp.int32) // S
    same_batch = (batch_id[:, None] == batch_id[None, :]).astype(jnp.float32)
    key_valid = mask_f.reshape(1, BS)
    bias = (same_batch * key_valid - 1.0) * 1e9                          # (BS, BS)

    # pooling selector with the mean division folded in:
    # pool[b, i] = (batch_id[i] == b) / attention_mask[b].sum(); pad rows are all-zero.
    counts = jnp.sum(mask_f, axis=1)                                     # (B,)
    inv_counts = 1.0 / counts
    if ROWS > B:
        inv_counts = jnp.concatenate(
            [inv_counts, jnp.ones((ROWS - B,), jnp.float32)], axis=0)    # pad-safe
    row_id = jnp.arange(ROWS, dtype=jnp.int32)
    pool = (row_id[:, None] == batch_id[None, :]).astype(jnp.float32) \
        * inv_counts[:, None]                                            # (ROWS, BS)

    packed = _pack_params(params)
    out_padded = encoder_and_pool(x_flat, bias, pool, packed)            # (ROWS, H_pad)
    return out_padded[:B, :H]


# ------------------------------ parameter init -------------------------------

def init_params(key, vocab=64, hidden=32, ffn=64):
    ks = jax.random.split(key, 8)
    H, F = hidden, ffn
    scale = 0.02
    return {
        "emb": scale * jax.random.normal(ks[0], (vocab, H), jnp.float32),
        "wq": scale * jax.random.normal(ks[1], (H, H), jnp.float32),
        "bq": jnp.zeros((1, H), jnp.float32),
        "wk": scale * jax.random.normal(ks[2], (H, H), jnp.float32),
        "bk": jnp.zeros((1, H), jnp.float32),
        "wv": scale * jax.random.normal(ks[3], (H, H), jnp.float32),
        "bv": jnp.zeros((1, H), jnp.float32),
        "wo": scale * jax.random.normal(ks[4], (H, H), jnp.float32),
        "bo": jnp.zeros((1, H), jnp.float32),
        "w1": scale * jax.random.normal(ks[5], (H, F), jnp.float32),
        "b1": jnp.zeros((1, F), jnp.float32),
        "w2": scale * jax.random.normal(ks[6], (F, H), jnp.float32),
        "b2": jnp.zeros((1, H), jnp.float32),
        "g1": jnp.ones((1, H), jnp.float32),
        "be1": jnp.zeros((1, H), jnp.float32),
        "g2": jnp.ones((1, H), jnp.float32),
        "be2": jnp.zeros((1, H), jnp.float32),
    }


# ---------------------------------- main --------------------------------------

if __name__ == "__main__":
    B, S, H, V = 2, 8, 32, 64
    key = jax.random.PRNGKey(0)
    k_param, k_ids = jax.random.split(key)

    params = init_params(k_param, vocab=V, hidden=H, ffn=2 * H)
    input_ids = jax.random.randint(k_ids, (B, S), 0, V, dtype=jnp.int32)
    # second sequence has 3 padding positions
    attention_mask = jnp.array([[1] * S, [1] * (S - 3) + [0] * 3], dtype=jnp.int32)

    out = model_forward(input_ids, attention_mask, params)   # (B, H) mean-pooled embeddings
    jax.block_until_ready(out)
    assert out.shape == (B, H) and out.dtype == jnp.float32
    assert bool(jnp.all(jnp.isfinite(out)))
    print("KERNEL_OK")
</pallas_src>

<mosaic_0001>
module attributes {stable_mosaic.version = 11 : i64} {
  func.func @encoder_pool_kernel(%arg0: i32, %arg1: memref<16x32xf32, #tpu.memory_space<vmem>>, %arg2: memref<16x16xf32, #tpu.memory_space<vmem>>, %arg3: memref<8x16xf32, #tpu.memory_space<vmem>>, %arg4: memref<32x96xbf16, #tpu.memory_space<vmem>>, %arg5: memref<1x96xf32, #tpu.memory_space<vmem>>, %arg6: memref<32x32xbf16, #tpu.memory_space<vmem>>, %arg7: memref<32x64xbf16, #tpu.memory_space<vmem>>, %arg8: memref<1x64xf32, #tpu.memory_space<vmem>>, %arg9: memref<64x32xbf16, #tpu.memory_space<vmem>>, %arg10: memref<8x32xf32, #tpu.memory_space<vmem>>, %arg11: memref<8x128xf32, #tpu.memory_space<vmem>>) attributes {dimension_semantics = [#tpu.dimension_semantics<arbitrary>], iteration_bounds = array<i64: 1>, scalar_prefetch = 0 : i64, scratch_operands = 0 : i64, tpu.core_type = #tpu.core_type<tc>, window_params = [{pipeline_mode = #tpu.pipeline_mode<synchronous>, transform_indices = @transform_0, window_bounds = array<i64: 16, 32>}, {pipeline_mode = #tpu.pipeline_mode<synchronous>, transform_indices = @transform_1, window_bounds = array<i64: 16, 16>}, {pipeline_mode = #tpu.pipeline_mode<synchronous>, transform_indices = @transform_2, window_bounds = array<i64: 8, 16>}, {pipeline_mode = #tpu.pipeline_mode<synchronous>, transform_indices = @transform_3, window_bounds = array<i64: 32, 96>}, {pipeline_mode = #tpu.pipeline_mode<synchronous>, transform_indices = @transform_4, window_bounds = array<i64: 1, 96>}, {pipeline_mode = #tpu.pipeline_mode<synchronous>, transform_indices = @transform_5, window_bounds = array<i64: 32, 32>}, {pipeline_mode = #tpu.pipeline_mode<synchronous>, transform_indices = @transform_6, window_bounds = array<i64: 32, 64>}, {pipeline_mode = #tpu.pipeline_mode<synchronous>, transform_indices = @transform_7, window_bounds = array<i64: 1, 64>}, {pipeline_mode = #tpu.pipeline_mode<synchronous>, transform_indices = @transform_8, window_bounds = array<i64: 64, 32>}, {pipeline_mode = #tpu.pipeline_mode<synchronous>, transform_indices = @transform_9, window_bounds = array<i64: 8, 32>}, {pipeline_mode = #tpu.pipeline_mode<synchronous>, transform_indices = @transform_10, window_bounds = array<i64: 8, 128>}]} {
    %c0 = arith.constant 0 : index
    %c0_0 = arith.constant 0 : index
    %0 = vector.load %arg1[%c0, %c0_0] : memref<16x32xf32, #tpu.memory_space<vmem>>, vector<16x32xf32>
    %1 = arith.truncf %0 : vector<16x32xf32> to vector<16x32xbf16>
    %c0_1 = arith.constant 0 : index
    %c0_2 = arith.constant 0 : index
    %2 = vector.load %arg4[%c0_1, %c0_2] : memref<32x96xbf16, #tpu.memory_space<vmem>>, vector<32x96xbf16>
    %cst = arith.constant dense<0.000000e+00> : vector<16x96xf32>
    %3 = tpu.matmul %1, %2, %cst {dimension_numbers = #tpu.dot_dimension_numbers<[1], [0], [0], [1], [0, 0, 1, 1], [], []>} : vector<16x32xbf16>, vector<32x96xbf16>, vector<16x96xf32> -> vector<16x96xf32>
    %c0_3 = arith.constant 0 : index
    %c0_4 = arith.constant 0 : index
    %4 = vector.load %arg5[%c0_3, %c0_4] : memref<1x96xf32, #tpu.memory_space<vmem>>, vector<1x96xf32>
    %5 = vector.broadcast %4 : vector<1x96xf32> to vector<16x96xf32>
    %6 = arith.addf %3, %5 : vector<16x96xf32>
    %7 = vector.extract_strided_slice %6 {offsets = [0, 0], sizes = [16, 32], strides = [1, 1]} : vector<16x96xf32> to vector<16x32xf32>
    %8 = arith.truncf %7 : vector<16x32xf32> to vector<16x32xbf16>
    %9 = vector.extract_strided_slice %6 {offsets = [0, 32], sizes = [16, 32], strides = [1, 1]} : vector<16x96xf32> to vector<16x32xf32>
    %10 = arith.truncf %9 : vector<16x32xf32> to vector<16x32xbf16>
    %11 = vector.extract_strided_slice %6 {offsets = [0, 64], sizes = [16, 32], strides = [1, 1]} : vector<16x96xf32> to vector<16x32xf32>
    %12 = arith.truncf %11 : vector<16x32xf32> to vector<16x32xbf16>
    %cst_5 = arith.constant dense<0.000000e+00> : vector<16x16xf32>
    %13 = tpu.matmul %8, %10, %cst_5 {dimension_numbers = #tpu.dot_dimension_numbers<[1], [1], [0], [0], [0, 0, 1, 0], [], []>} : vector<16x32xbf16>, vector<16x32xbf16>, vector<16x16xf32> -> vector<16x16xf32>
    %cst_6 = arith.constant 0.176776692 : f32
    %14 = vector.broadcast %cst_6 : f32 to vector<16x16xf32>
    %15 = arith.mulf %13, %14 : vector<16x16xf32>
    %c0_7 = arith.constant 0 : index
    %c0_8 = arith.constant 0 : index
    %16 = vector.load %arg2[%c0_7, %c0_8] : memref<16x16xf32, #tpu.memory_space<vmem>>, vector<16x16xf32>
    %17 = arith.addf %15, %16 : vector<16x16xf32>
    %cst_9 = arith.constant dense<0xFF800000> : vector<16xf32>
    %18 = vector.multi_reduction <maximumf>, %17, %cst_9 [1] : vector<16x16xf32> to vector<16xf32>
    %19 = vector.shape_cast %18 : vector<16xf32> to vector<16x1xf32>
    %20 = vector.broadcast %19 : vector<16x1xf32> to vector<16x16xf32>
    %21 = arith.subf %17, %20 : vector<16x16xf32>
    %22 = math.exp %21 : vector<16x16xf32>
    %cst_10 = arith.constant dense<0.000000e+00> : vector<16xf32>
    %23 = vector.multi_reduction <add>, %22, %cst_10 [1] : vector<16x16xf32> to vector<16xf32>
    %24 = vector.shape_cast %23 : vector<16xf32> to vector<16x1xf32>
    %25 = tpu.reciprocal %24 {approx = true} : vector<16x1xf32> -> vector<16x1xf32>
    %26 = vector.broadcast %25 : vector<16x1xf32> to vector<16x16xf32>
    %27 = arith.mulf %22, %26 : vector<16x16xf32>
    %28 = arith.truncf %27 : vector<16x16xf32> to vector<16x16xbf16>
    %cst_11 = arith.constant dense<0.000000e+00> : vector<16x32xf32>
    %29 = tpu.matmul %28, %12, %cst_11 {dimension_numbers = #tpu.dot_dimension_numbers<[1], [0], [0], [1], [0, 0, 1, 1], [], []>} : vector<16x16xbf16>, vector<16x32xbf16>, vector<16x32xf32> -> vector<16x32xf32>
    %c0_12 = arith.constant 0 : index
    %c0_13 = arith.constant 0 : index
    %30 = vector.load %arg10[%c0_12, %c0_13] : memref<8x32xf32, #tpu.memory_space<vmem>>, vector<8x32xf32>
    %31 = vector.extract_strided_slice %30 {offsets = [0, 0], sizes = [1, 32], strides = [1, 1]} : vector<8x32xf32> to vector<1x32xf32>
    %32 = vector.extract_strided_slice %30 {offsets = [1, 0], sizes = [1, 32], strides = [1, 1]} : vector<8x32xf32> to vector<1x32xf32>
    %33 = vector.extract_strided_slice %30 {offsets = [2, 0], sizes = [1, 32], strides = [1, 1]} : vector<8x32xf32> to vector<1x32xf32>
    %34 = vector.extract_strided_slice %30 {offsets = [3, 0], sizes = [1, 32], strides = [1, 1]} : vector<8x32xf32> to vector<1x32xf32>
    %35 = vector.extract_strided_slice %30 {offsets = [4, 0], sizes = [1, 32], strides = [1, 1]} : vector<8x32xf32> to vector<1x32xf32>
    %36 = vector.extract_strided_slice %30 {offsets = [5, 0], sizes = [1, 32], strides = [1, 1]} : vector<8x32xf32> to vector<1x32xf32>
    %37 = arith.truncf %29 : vector<16x32xf32> to vector<16x32xbf16>
    %c0_14 = arith.constant 0 : index
    %c0_15 = arith.constant 0 : index
    %38 = vector.load %arg6[%c0_14, %c0_15] : memref<32x32xbf16, #tpu.memory_space<vmem>>, vector<32x32xbf16>
    %cst_16 = arith.constant dense<0.000000e+00> : vector<16x32xf32>
    %39 = tpu.matmul %37, %38, %cst_16 {dimension_numbers = #tpu.dot_dimension_numbers<[1], [0], [0], [1], [0, 0, 1, 1], [], []>} : vector<16x32xbf16>, vector<32x32xbf16>, vector<16x32xf32> -> vector<16x32xf32>
    %40 = vector.broadcast %31 : vector<1x32xf32> to vector<16x32xf32>
    %41 = arith.addf %39, %40 : vector<16x32xf32>
    %42 = arith.addf %0, %41 : vector<16x32xf32>
    %cst_17 = arith.constant dense<0.000000e+00> : vector<16xf32>
    %43 = vector.multi_reduction <add>, %42, %cst_17 [1] : vector<16x32xf32> to vector<16xf32>
    %44 = vector.shape_cast %43 : vector<16xf32> to vector<16x1xf32>
    %cst_18 = arith.constant 3.200000e+01 : f32
    %45 = vector.broadcast %cst_18 : f32 to vector<16x1xf32>
    %46 = arith.divf %44, %45 : vector<16x1xf32>
    %47 = vector.broadcast %46 : vector<16x1xf32> to vector<16x32xf32>
    %48 = arith.subf %42, %47 : vector<16x32xf32>
    %49 = vector.broadcast %46 : vector<16x1xf32> to vector<16x32xf32>
    %50 = arith.subf %42, %49 : vector<16x32xf32>
    %51 = arith.mulf %48, %50 : vector<16x32xf32>
    %cst_19 = arith.constant dense<0.000000e+00> : vector<16xf32>
    %52 = vector.multi_reduction <add>, %51, %cst_19 [1] : vector<16x32xf32> to vector<16xf32>
    %53 = vector.shape_cast %52 : vector<16xf32> to vector<16x1xf32>
    %cst_20 = arith.constant 3.200000e+01 : f32
    %54 = vector.broadcast %cst_20 : f32 to vector<16x1xf32>
    %55 = arith.divf %53, %54 : vector<16x1xf32>
    %56 = vector.broadcast %46 : vector<16x1xf32> to vector<16x32xf32>
    %57 = arith.subf %42, %56 : vector<16x32xf32>
    %cst_21 = arith.constant 9.99999974E-6 : f32
    %58 = vector.broadcast %cst_21 : f32 to vector<16x1xf32>
    %59 = arith.addf %55, %58 : vector<16x1xf32>
    %60 = math.rsqrt %59 : vector<16x1xf32>
    %61 = vector.broadcast %60 : vector<16x1xf32> to vector<16x32xf32>
    %62 = arith.mulf %57, %61 : vector<16x32xf32>
    %63 = vector.broadcast %33 : vector<1x32xf32> to vector<16x32xf32>
    %64 = arith.mulf %62, %63 : vector<16x32xf32>
    %65 = vector.broadcast %34 : vector<1x32xf32> to vector<16x32xf32>
    %66 = arith.addf %64, %65 : vector<16x32xf32>
    %67 = arith.truncf %66 : vector<16x32xf32> to vector<16x32xbf16>
    %c0_22 = arith.constant 0 : index
    %c0_23 = arith.constant 0 : index
    %68 = vector.load %arg7[%c0_22, %c0_23] : memref<32x64xbf16, #tpu.memory_space<vmem>>, vector<32x64xbf16>
    %cst_24 = arith.constant dense<0.000000e+00> : vector<16x64xf32>
    %69 = tpu.matmul %67, %68, %cst_24 {dimension_numbers = #tpu.dot_dimension_numbers<[1], [0], [0], [1], [0, 0, 1, 1], [], []>} : vector<16x32xbf16>, vector<32x64xbf16>, vector<16x64xf32> -> vector<16x64xf32>
    %c0_25 = arith.constant 0 : index
    %c0_26 = arith.constant 0 : index
    %70 = vector.load %arg8[%c0_25, %c0_26] : memref<1x64xf32, #tpu.memory_space<vmem>>, vector<1x64xf32>
    %71 = vector.broadcast %70 : vector<1x64xf32> to vector<16x64xf32>
    %72 = arith.addf %69, %71 : vector<16x64xf32>
    %cst_27 = arith.constant 5.000000e-01 : f32
    %73 = vector.broadcast %cst_27 : f32 to vector<16x64xf32>
    %74 = arith.mulf %73, %72 : vector<16x64xf32>
    %cst_28 = arith.constant 4.471500e-02 : f32
    %75 = vector.broadcast %cst_28 : f32 to vector<16x64xf32>
    %76 = arith.mulf %75, %72 : vector<16x64xf32>
    %77 = arith.mulf %76, %72 : vector<16x64xf32>
    %78 = arith.mulf %77, %72 : vector<16x64xf32>
    %79 = arith.addf %72, %78 : vector<16x64xf32>
    %cst_29 = arith.constant 0.797884583 : f32
    %80 = vector.broadcast %cst_29 : f32 to vector<16x64xf32>
    %81 = arith.mulf %80, %79 : vector<16x64xf32>
    %82 = math.tanh %81 : vector<16x64xf32>
    %cst_30 = arith.constant 1.000000e+00 : f32
    %83 = vector.broadcast %cst_30 : f32 to vector<16x64xf32>
    %84 = arith.addf %83, %82 : vector<16x64xf32>
    %85 = arith.mulf %74, %84 : vector<16x64xf32>
    %86 = arith.truncf %85 : vector<16x64xf32> to vector<16x64xbf16>
    %c0_31 = arith.constant 0 : index
    %c0_32 = arith.constant 0 : index
    %87 = vector.load %arg9[%c0_31, %c0_32] : memref<64x32xbf16, #tpu.memory_space<vmem>>, vector<64x32xbf16>
    %cst_33 = arith.constant dense<0.000000e+00> : vector<16x32xf32>
    %88 = tpu.matmul %86, %87, %cst_33 {dimension_numbers = #tpu.dot_dimension_numbers<[1], [0], [0], [1], [0, 0, 1, 1], [], []>} : vector<16x64xbf16>, vector<64x32xbf16>, vector<16x32xf32> -> vector<16x32xf32>
    %89 = vector.broadcast %32 : vector<1x32xf32> to vector<16x32xf32>
    %90 = arith.addf %88, %89 : vector<16x32xf32>
    %91 = arith.addf %66, %90 : vector<16x32xf32>
    %cst_34 = arith.constant dense<0.000000e+00> : vector<16xf32>
    %92 = vector.multi_reduction <add>, %91, %cst_34 [1] : vector<16x32xf32> to vector<16xf32>
    %93 = vector.shape_cast %92 : vector<16xf32> to vector<16x1xf32>
    %cst_35 = arith.constant 3.200000e+01 : f32
    %94 = vector.broadcast %cst_35 : f32 to vector<16x1xf32>
    %95 = arith.divf %93, %94 : vector<16x1xf32>
    %96 = vector.broadcast %95 : vector<16x1xf32> to vector<16x32xf32>
    %97 = arith.subf %91, %96 : vector<16x32xf32>
    %98 = vector.broadcast %95 : vector<16x1xf32> to vector<16x32xf32>
    %99 = arith.subf %91, %98 : vector<16x32xf32>
    %100 = arith.mulf %97, %99 : vector<16x32xf32>
    %cst_36 = arith.constant dense<0.000000e+00> : vector<16xf32>
    %101 = vector.multi_reduction <add>, %100, %cst_36 [1] : vector<16x32xf32> to vector<16xf32>
    %102 = vector.shape_cast %101 : vector<16xf32> to vector<16x1xf32>
    %cst_37 = arith.constant 3.200000e+01 : f32
    %103 = vector.broadcast %cst_37 : f32 to vector<16x1xf32>
    %104 = arith.divf %102, %103 : vector<16x1xf32>
    %105 = vector.broadcast %95 : vector<16x1xf32> to vector<16x32xf32>
    %106 = arith.subf %91, %105 : vector<16x32xf32>
    %cst_38 = arith.constant 9.99999974E-6 : f32
    %107 = vector.broadcast %cst_38 : f32 to vector<16x1xf32>
    %108 = arith.addf %104, %107 : vector<16x1xf32>
    %109 = math.rsqrt %108 : vector<16x1xf32>
    %110 = vector.broadcast %109 : vector<16x1xf32> to vector<16x32xf32>
    %111 = arith.mulf %106, %110 : vector<16x32xf32>
    %112 = vector.broadcast %35 : vector<1x32xf32> to vector<16x32xf32>
    %113 = arith.mulf %111, %112 : vector<16x32xf32>
    %114 = vector.broadcast %36 : vector<1x32xf32> to vector<16x32xf32>
    %115 = arith.addf %113, %114 : vector<16x32xf32>
    %c0_39 = arith.constant 0 : index
    %c0_40 = arith.constant 0 : index
    %116 = vector.load %arg3[%c0_39, %c0_40] : memref<8x16xf32, #tpu.memory_space<vmem>>, vector<8x16xf32>
    %cst_41 = arith.constant dense<0.000000e+00> : vector<8x32xf32>
    %117 = tpu.matmul %116, %115, %cst_41 {dimension_numbers = #tpu.dot_dimension_numbers<[1], [0], [0], [1], [0, 0, 1, 1], [], []>} : vector<8x16xf32>, vector<16x32xf32>, vector<8x32xf32> -> vector<8x32xf32>
    %cst_42 = arith.constant 0.000000e+00 : f32
    %118 = vector.broadcast %cst_42 : f32 to vector<8x96xf32>
    %119 = tpu.concatenate %117, %118 in 1 : vector<8x32xf32>, vector<8x96xf32> -> vector<8x128xf32>
    %c0_43 = arith.constant 0 : index
    %c0_44 = arith.constant 0 : index
    %120 = vector.load %arg11[%c0_43, %c0_44] : memref<8x128xf32, #tpu.memory_space<vmem>>, vector<8x128xf32>
    tpu.vector_store %arg11[%c0_43, %c0_44], %119 {strides = array<i32>} : memref<8x128xf32, #tpu.memory_space<vmem>>, vector<8x128xf32>,
    return
  }
  func.func @transform_0(%arg0: i32) -> (i32, i32) {
    %c0_i32 = arith.constant 0 : i32
    %c0_i32_0 = arith.constant 0 : i32
    %c0_i32_1 = arith.constant 0 : i32
    return %c0_i32, %c0_i32_0 : i32, i32
  }
  func.func @transform_1(%arg0: i32) -> (i32, i32) {
    %c0_i32 = arith.constant 0 : i32
    %c0_i32_0 = arith.constant 0 : i32
    %c0_i32_1 = arith.constant 0 : i32
    return %c0_i32, %c0_i32_0 : i32, i32
  }
  func.func @transform_2(%arg0: i32) -> (i32, i32) {
    %c0_i32 = arith.constant 0 : i32
    %c0_i32_0 = arith.constant 0 : i32
    %c0_i32_1 = arith.constant 0 : i32
    return %c0_i32, %c0_i32_0 : i32, i32
  }
  func.func @transform_3(%arg0: i32) -> (i32, i32) {
    %c0_i32 = arith.constant 0 : i32
    %c0_i32_0 = arith.constant 0 : i32
    %c0_i32_1 = arith.constant 0 : i32
    return %c0_i32, %c0_i32_0 : i32, i32
  }
  func.func @transform_4(%arg0: i32) -> (i32, i32) {
    %c0_i32 = arith.constant 0 : i32
    %c0_i32_0 = arith.constant 0 : i32
    %c0_i32_1 = arith.constant 0 : i32
    return %c0_i32, %c0_i32_0 : i32, i32
  }
  func.func @transform_5(%arg0: i32) -> (i32, i32) {
    %c0_i32 = arith.constant 0 : i32
    %c0_i32_0 = arith.constant 0 : i32
    %c0_i32_1 = arith.constant 0 : i32
    return %c0_i32, %c0_i32_0 : i32, i32
  }
  func.func @transform_6(%arg0: i32) -> (i32, i32) {
    %c0_i32 = arith.constant 0 : i32
    %c0_i32_0 = arith.constant 0 : i32
    %c0_i32_1 = arith.constant 0 : i32
    return %c0_i32, %c0_i32_0 : i32, i32
  }
  func.func @transform_7(%arg0: i32) -> (i32, i32) {
    %c0_i32 = arith.constant 0 : i32
    %c0_i32_0 = arith.constant 0 : i32
    %c0_i32_1 = arith.constant 0 : i32
    return %c0_i32, %c0_i32_0 : i32, i32
  }
  func.func @transform_8(%arg0: i32) -> (i32, i32) {
    %c0_i32 = arith.constant 0 : i32
    %c0_i32_0 = arith.constant 0 : i32
    %c0_i32_1 = arith.constant 0 : i32
    return %c0_i32, %c0_i32_0 : i32, i32
  }
  func.func @transform_9(%arg0: i32) -> (i32, i32) {
    %c0_i32 = arith.constant 0 : i32
    %c0_i32_0 = arith.constant 0 : i32
    %c0_i32_1 = arith.constant 0 : i32
    return %c0_i32, %c0_i32_0 : i32, i32
  }
  func.func @transform_10(%arg0: i32) -> (i32, i32) {
    %c0_i32 = arith.constant 0 : i32
    %c0_i32_0 = arith.constant 0 : i32
    %c0_i32_1 = arith.constant 0 : i32
    return %c0_i32, %c0_i32_0 : i32, i32
  }
}

</mosaic_0001>

<bundles_post_ra>
// kernel: tpu_custom_call.1
= control target key start
LH: loop header
LB: loop body
LE: loop exit
PB: predicated region body
PF: predicated region fallthrough
CT: control target
= control target key end

     0   :  { %15 = vsyncpa [#allocation3], 0  ;;  %s934_s0 = inlined_call_operand.vmem [shape: f32[16,32], index: 0, kind: input, shape index: {}]   ;;  %s935_s1 = inlined_call_operand.vmem [shape: f32[16,16], index: 1, kind: input, shape index: {}]   ;;  %s936_s2 = inlined_call_operand.hbm [shape: f32[8,16], index: 2, kind: input, shape index: {}]   ;;  %s937_s3 = inlined_call_operand.vmem [shape: bf16[32,96], index: 3, kind: input, shape index: {}]   ;;  %s938_s4 = inlined_call_operand.hbm [shape: f32[1,96], index: 4, kind: input, shape index: {}]   ;;  %s939_s5 = inlined_call_operand.hbm [shape: bf16[32,32], index: 5, kind: input, shape index: {}]   ;;  %s940_s6 = inlined_call_operand.hbm [shape: bf16[32,64], index: 6, kind: input, shape index: {}]   ;;  %s941_s7 = inlined_call_operand.hbm [shape: f32[1,64], index: 7, kind: input, shape index: {}]   ;;  %s942_s8 = inlined_call_operand.vmem [shape: bf16[64,32], index: 8, kind: input, shape index: {}]   ;;  %s943_s9 = inlined_call_operand.vmem [shape: f32[8,32], index: 9, kind: input, shape index: {}]   ;;  %s944_s10 = inlined_call_operand.hbm [shape: f32[8,128], index: 10, kind: output, shape index: {}]  }
   0x1   :  { %16 = vsyncpa [#allocation6], 0 }
   0x2   :  { %17 = vsyncpa [#allocation9], 0  ;;  %s41_s15 = sshll.u32 %s938_s4, 4  ;;  %s42_s15 = int_to_ptr.hbm [resolvable:$true] %s41_s15 }
   0x3   :  { %18 = vsyncpa [#allocation4], 0  ;;  %s767_s16 = smov [#allocation5]   ;;  %s64_s20 = sshll.u32 %s940_s6, 4  ;;  %s65_s20 = int_to_ptr.hbm [resolvable:$true] %s64_s20 }
   0x4   :  { %s43_s17 = sshll.u32 %s767_s16, 4  ;;  %s768_s21 = smov [#allocation8]   ;;  %s44_s17 = int_to_ptr.vmem [resolvable:$true] %s43_s17 }
   0x5   :  { %46 = dma.hbm_to_vmem [thread:$0]  %s42_s15, 16, %s44_s17, [#allocation6]  }
   0x6   :  { %s66_s22 = sshll.u32 %s768_s21, 4  ;;  %s28_s25 = sshll.u32 %s936_s2, 4  ;;  %s67_s22 = int_to_ptr.vmem [resolvable:$true] %s66_s22  ;;  %s29_s25 = int_to_ptr.hbm [resolvable:$true] %s28_s25 }
   0x7   :  { %s769_s4 = smov 64   ;;  %s770_s26 = smov 4  }
   0x8   :  { %72 = dma.hbm_to_vmem [thread:$0]  %s65_s20, 256, %s67_s22, [#allocation9], %s769_s4, %s769_s4, %s770_s26  }
   0x9   :  { %s51_s29 = sshll.u32 %s939_s5, 4  ;;  %s771_s30 = smov [#allocation2]   ;;  %s52_s29 = int_to_ptr.hbm [resolvable:$true] %s51_s29 }
   0xa   :  { %s30_s6 = sshll.u32 %s771_s30, 4  ;;  %s772_s11 = smov [#allocation7]   ;;  %s31_s6 = int_to_ptr.vmem [resolvable:$true] %s30_s6 }
   0xb   :  { %33 = dma.hbm_to_vmem [thread:$0]  %s29_s25, 128, %s31_s6, [#allocation3]  }
   0xc   :  { %s53_s12 = sshll.u32 %s772_s11, 4  ;;  %s78_s14 = sshll.u32 %s941_s7, 4  ;;  %s54_s12 = int_to_ptr.vmem [resolvable:$true] %s53_s12  ;;  %s79_s14 = int_to_ptr.hbm [resolvable:$true] %s78_s14 }
   0xd   :  { %59 = dma.hbm_to_vmem [thread:$0]  %s52_s29, 256, %s54_s12, [#allocation6], %s769_s4, %s769_s4, %s770_s26  }
   0xe   :  { %s773_s15 = smov [#allocation10]  }
   0xf   :  { %s80_s16 = sshll.u32 %s773_s15, 4  ;;  %s81_s16 = int_to_ptr.vmem [resolvable:$true] %s80_s16 }
  0x10   :  { %83 = dma.hbm_to_vmem [thread:$0]  %s79_s14, 16, %s81_s16, [#allocation9]  }
  0x11   :  { %759 = dma.done.wait [#allocation3], 128  }
  0x12   :  { %760 = vsyncadd [#allocation3], 4294967168 }
  0x13   :  { %761 = dma.done.wait [#allocation6], 272  }
  0x14   :  { %762 = vsyncadd [#allocation6], 4294967024 }
  0x15   :  { %763 = dma.done.wait [#allocation9], 272  }
  0x16   :  { %764 = vsyncadd [#allocation9], 4294967024  ;;  %v572_v0 = vld [vmem:[%s937_s3 + $0x8] sm:$0xff]  ;;  %v571_v1 = vld [vmem:[%s937_s3] sm:$0xff]  ;;  %vm132_vm0 = vcmask 261120   ;;  %s774_s3 = smov 96  }
  0x17   :  { %142 = vmatpush.bf16.msra.mxu0 %v572_v0  ;;  %v860_v2 = vld [vmem:[%s934_s0] sm:$0xff]  ;;  %v865_v3 = vld [vmem:[%s934_s0 + $0x8] sm:$0xff]  ;;  %vm180_vm1 = vcmask 130048   ;;  %v574_v41 = vld [vmem:[#allocation7 + $0x8] sm:$0xff]  ;;  %v775_v56 = vmov 32.0   ;;  %vm409_vm9 = vcmask 523264  }
  0x18   :  { %v111_v4 = vpack.c.bf16 %v865_v3, %v860_v2  ;;  %v591_v6 = vld [vmem:[#allocation5] ss:$0 sm:$0xff]  ;;  %v176_v14 = vld [vmem:[%s935_s1] sm:$0xff]  ;;  %252 = vmatpush.bf16.msra.mxu3 %v574_v41  ;;  %v573_v42 = vld [vmem:[#allocation7] sm:$0xff]  ;;  %s512_s14 = sshll.u32 %s944_s10, 4  ;;  %s513_s14 = int_to_ptr.hbm [resolvable:$true] %s512_s14 }
  0x19   :  { %v177_v19 = vld [vmem:[%s935_s1 + $0x8] sm:$0xff]  ;;  %v888_v46 = vld [vmem:[%s943_s9] sm:$0xff]  ;;  %v579_v41 = vld [vmem:[%s942_s8 + $0x10] sm:$0xff] }
  0x1a   :  { %v230_v47 = vperm.slane %v888_v46, 0 }
  0x1b   :  { %143 = vmatpush.bf16.msra.mxu0 %v571_v1 }
  0x1c   :  { %253 = vmatpush.bf16.msra.mxu3 %v573_v42  ;;  %v578_v42 = vld [vmem:[%s942_s8 + $0x8] sm:$0xff] }
  0x1e   :  { %532 = vmatmul.msk.bf16.vlgmr.msra.gmra.mxu0 %vm132_vm0, %v111_v4 }
  0x9b   :  { %v145_v5 = vpop.f32.mrf.mxu0 }
  0x9c   :  { %v146_v8 = vadd.f32 %v591_v6, %v145_v5 }
  0xa3   :  { %v147_v7 = vpop.f32.mrf.mxu0 }
  0xa4   :  { %v148_v9 = vadd.f32 %v591_v6, %v147_v7 }
  0xa6   :  { %v150_v10 = vpack.c.bf16 %v148_v9, %v146_v8  ;;  %v576_v9 = vld [vmem:[#allocation8 + $0x8] sm:$0xff] }
  0xa8   :  { %152 = vrot.lane.b32.xlu0 %v150_v10, %s774_s3 }
 0x11a   :  { %v153_v11 = vpop.permute.xlu0 %152 }
 0x11b   :  { %v158_v12 = vsel %vm132_vm0, %v153_v11, 0  ;;  %v575_v11 = vld [vmem:[#allocation8] sm:$0xff] }
 0x11c   :  { %167 = vmatpush.bf16.xpose.msra.mxu1 %v158_v12 }
 0x123   :  { %533 = vmatmul.msk.bf16.vlgmr.msra.gmra.mxu1 %vm132_vm0, %v150_v10 }
 0x1a0   :  { %v169_v13 = vpop.f32.mrf.mxu1 }
 0x1a1   :  { %v174_v15 = vmul.f32 0.17677669, %v169_v13 }
 0x1a3   :  { %v178_v16 = vadd.f32 %v176_v14, %v174_v15 }
 0x1a5   :  { %v181_v17 = vsel %vm180_vm1, %v178_v16, -inf }
 0x1a6   :  { %182 = vmax.xlane.f32.xlu0 %v181_v17 }
 0x1a8   :  { %v171_v18 = vpop.f32.mrf.mxu1 }
 0x1a9   :  { %v175_v20 = vmul.f32 0.17677669, %v171_v18 }
 0x1ab   :  { %v179_v21 = vadd.f32 %v177_v19, %v175_v20 }
 0x1ad   :  { %v184_v22 = vsel %vm180_vm1, %v179_v21, -inf }
 0x1ae   :  { %185 = vmax.xlane.f32.xlu1 %v184_v22 }
 0x219   :  { %v183_v23 = vpop.xlane.xlu0 %182 }
 0x21a   :  { %v187_v24 = vsub.f32 %v178_v16, %v183_v23 }
 0x21c   :  { %v189_v25 = vmul.f32 1.442695, %v187_v24 }
 0x21e   :  { %593 = vpow2.f32 %v189_v25 }
 0x221   :  { %v186_v26 = vpop.xlane.xlu1 %185 }
 0x222   :  { %v188_v27 = vsub.f32 %v179_v21, %v186_v26 }
 0x224   :  { %v594_v28 = vpop.eup %593  ;;  %v191_v29 = vmul.f32 1.442695, %v188_v27 }
 0x225   :  { %v193_v30 = vsel %vm180_vm1, %v594_v28, 0.0 }
 0x226   :  { %595 = vpow2.f32 %v191_v29  ;;  %194 = vadd.xlane.f32.xlu1 %v193_v30  ;;  %v313_v30 = vperm.slane %v888_v46, 2 }
 0x22c   :  { %v596_v31 = vpop.eup %595 }
 0x22d   :  { %v196_v32 = vsel %vm180_vm1, %v596_v31, 0.0 }
 0x22e   :  { %197 = vadd.xlane.f32.xlu2 %v196_v32 }
 0x246   :  { %204 = vrot.lane.b32.xlu2 %v150_v10, %s769_s4 }
 0x299   :  { %v195_v33 = vpop.xlane.xlu1 %194 }
 0x29a   :  { %597 = vrcp.f32 %v195_v33 }
 0x2a0   :  { %v598_v35 = vpop.eup %597 }
 0x2a1   :  { %v198_v34 = vpop.xlane.xlu2 %197  ;;  %v201_v38 = vmul.f32 %v598_v35, %v594_v28  ;;  %v316_v35 = vperm.slane %v888_v46, 3 }
 0x2a2   :  { %599 = vrcp.f32 %v198_v34 }
 0x2a3   :  { %601 = vrcp.f32 %v775_v56 }
 0x2a8   :  { %v600_v36 = vpop.eup %599 }
 0x2a9   :  { %v205_v37 = vpop.permute.xlu2 %204  ;;  %v202_v39 = vmul.f32 %v600_v36, %v596_v31  ;;  %v602_v57 = vpop.eup %601 }
 0x2aa   :  { %217 = vmatpush.bf16.msra.mxu2 %v205_v37  ;;  %v269_v58 = vmul.f32 32.0, %v602_v57  ;;  %vm273_vm2 = vweird.f32 %v602_v57 }
 0x2ab   :  { %v203_v40 = vpack.c.bf16 %v202_v39, %v201_v38 }
 0x2ac   :  { %v270_v59 = vsub.f32 1.0, %v269_v58 }
 0x2ad   :  { %534 = vmatmul.msk.bf16.vlgmr.msra.gmra.mxu2 %vm180_vm1, %v203_v40  ;;  %v580_v40 = vld [vmem:[%s942_s8 + $0x18] sm:$0xff] }
 0x2ae   :  { %v271_v60 = vmul.f32 %v602_v57, %v270_v59  ;;  %349 = vmatpush.bf16.msrb.mxu2 %v576_v9  ;;  %417 = vmatpush.bf16.msrb.mxu0 %v580_v40 }
 0x2b0   :  { %v272_v61 = vadd.f32 %v602_v57, %v271_v60 }
 0x2b2   :  { %v895_v62 = vsel %vm273_vm2, %v602_v57, %v272_v61  ;;  %350 = vmatpush.bf16.msrb.mxu2 %v575_v11  ;;  %418 = vmatpush.bf16.msrb.mxu0 %v579_v41 }
 0x2b6   :  { %419 = vmatpush.bf16.msrb.mxu0 %v578_v42 }
 0x330   :  { %v219_v43 = vpop.f32.mrf.mxu2 }
 0x338   :  { %v221_v44 = vpop.f32.mrf.mxu2 }
 0x339   :  { %v225_v45 = vpack.c.bf16 %v221_v44, %v219_v43  ;;  %v577_v43 = vld [vmem:[%s942_s8] sm:$0xff]  ;;  %v592_v44 = vld [vmem:[#allocation10] ss:$0 sm:$0xff]  ;;  %s776_s8 = smov [#allocation11]  }
 0x33a   :  { %420 = vmatpush.bf16.msrb.mxu0 %v577_v43  ;;  %s510_s12 = sshll.u32 %s776_s8, 4  ;;  %s511_s12 = int_to_ptr.vmem [resolvable:$true] %s510_s12 }
 0x33b   :  { %543 = vmatmul.msk.bf16.vlgmr.msra.gmra.mxu3 %vm132_vm0, %v225_v45 }
 0x3be   :  { %v255_v48 = vpop.f32.mrf.mxu3 }
 0x3bf   :  { %v256_v49 = vadd.f32 %v255_v48, %v230_v47 }
 0x3c1   :  { %v260_v50 = vadd.f32 %v256_v49, %v860_v2 }
 0x3c3   :  { %v262_v51 = vsel %vm132_vm0, %v260_v50, 0.0 }
 0x3c4   :  { %263 = vadd.xlane.f32.xlu1 %v262_v51 }
 0x3c6   :  { %v257_v52 = vpop.f32.mrf.mxu3 }
 0x3c7   :  { %v258_v53 = vadd.f32 %v257_v52, %v230_v47 }
 0x3c9   :  { %v261_v54 = vadd.f32 %v258_v53, %v865_v3 }
 0x3cb   :  { %v265_v55 = vsel %vm132_vm0, %v261_v54, 0.0 }
 0x3cc   :  { %266 = vadd.xlane.f32.xlu1 %v265_v55 }
 0x437   :  { %v264_v63 = vpop.xlane.xlu1 %263 }
 0x438   :  { %v275_v0 = vmul.f32 %v895_v62, %v264_v63 }
 0x43a   :  { %v277_v1 = vsub.f32 %v260_v50, %v275_v0 }
 0x43c   :  { %v279_v2 = vmul.f32 %v277_v1, %v277_v1 }
 0x43e   :  { %v281_v3 = vsel %vm132_vm0, %v279_v2, 0.0 }
 0x43f   :  { %282 = vadd.xlane.f32.xlu1 %v281_v3  ;;  %v267_v4 = vpop.xlane.xlu1 %266 }
 0x440   :  { %v276_v5 = vmul.f32 %v895_v62, %v267_v4 }
 0x442   :  { %v278_v6 = vsub.f32 %v261_v54, %v276_v5 }
 0x444   :  { %v280_v7 = vmul.f32 %v278_v6, %v278_v6 }
 0x446   :  { %v284_v8 = vsel %vm132_vm0, %v280_v7, 0.0  ;;  %v384_v7 = vperm.slane %v888_v46, 1 }
 0x447   :  { %285 = vadd.xlane.f32.xlu2 %v284_v8 }
 0x4b2   :  { %v283_v10 = vpop.xlane.xlu1 %282 }
 0x4b3   :  { %v287_v12 = vmul.f32 %v283_v10, %v895_v62 }
 0x4b5   :  { %v289_v13 = vadd.f32 1e-05, %v287_v12 }
 0x4b7   :  { %603 = vrsqrt.f32 %v289_v13  ;;  %vm297_vm4 = vweird.f32 %v289_v13 }
 0x4ba   :  { %v286_v14 = vpop.xlane.xlu2 %285 }
 0x4bb   :  { %v288_v15 = vmul.f32 %v286_v14, %v895_v62 }
 0x4bd   :  { %v604_v16 = vpop.eup %603  ;;  %v290_v17 = vadd.f32 1e-05, %v288_v15 }
 0x4be   :  { %v292_v18 = vmul.f32 %v604_v16, %v289_v13  ;;  %vm298_vm3 = vweird.f32 %v604_v16 }
 0x4bf   :  { %605 = vrsqrt.f32 %v290_v17  ;;  %vm299_vm5 = vmor %vm297_vm4, %vm298_vm3  ;;  %vm307_vm7 = vweird.f32 %v290_v17 }
 0x4c0   :  { %v293_v19 = vmul.f32 %v604_v16, %v292_v18 }
 0x4c2   :  { %v294_v20 = vmul.f32 0.5, %v293_v19 }
 0x4c4   :  { %v295_v21 = vsub.f32 1.5, %v294_v20 }
 0x4c5   :  { %v606_v22 = vpop.eup %605 }
 0x4c6   :  { %v296_v23 = vmul.f32 %v604_v16, %v295_v21  ;;  %v302_v24 = vmul.f32 %v606_v22, %v290_v17  ;;  %vm308_vm6 = vweird.f32 %v606_v22 }
 0x4c7   :  { %vm309_vm8 = vmor %vm307_vm7, %vm308_vm6 }
 0x4c8   :  { %v303_v25 = vmul.f32 %v606_v22, %v302_v24  ;;  %v300_v26 = vsel %vm299_vm5, %v604_v16, %v296_v23 }
 0x4c9   :  { %v311_v29 = vmul.f32 %v300_v26, %v277_v1 }
 0x4ca   :  { %v304_v27 = vmul.f32 0.5, %v303_v25 }
 0x4cb   :  { %v314_v34 = vmul.f32 %v313_v30, %v311_v29 }
 0x4cc   :  { %v305_v28 = vsub.f32 1.5, %v304_v27 }
 0x4cd   :  { %v317_v37 = vadd.f32 %v316_v35, %v314_v34 }
 0x4ce   :  { %v306_v31 = vmul.f32 %v606_v22, %v305_v28 }
 0x4d0   :  { %v310_v32 = vsel %vm309_vm8, %v606_v22, %v306_v31 }
 0x4d1   :  { %v312_v33 = vmul.f32 %v310_v32, %v278_v6 }
 0x4d3   :  { %v315_v36 = vmul.f32 %v313_v30, %v312_v33 }
 0x4d5   :  { %v318_v38 = vadd.f32 %v316_v35, %v315_v36 }
 0x4d7   :  { %v319_v39 = vpack.c.bf16 %v318_v38, %v317_v37 }
 0x4d9   :  { %552 = vmatmul.msk.bf16.vlgmr.msrb.gmra.mxu2 %vm132_vm0, %v319_v39  ;;  %v473_v39 = vperm.slane %v888_v46, 4 }
 0x55c   :  { %v352_v45 = vpop.f32.mrf.mxu2 }
 0x55d   :  { %v353_v47 = vadd.f32 %v592_v44, %v352_v45 }
 0x55f   :  { %v359_v48 = vmul.f32 0.044715, %v353_v47  ;;  %v357_v0 = vmul.f32 0.5, %v353_v47 }
 0x561   :  { %v361_v49 = vmul.f32 %v359_v48, %v353_v47 }
 0x563   :  { %v363_v50 = vmul.f32 %v361_v49, %v353_v47 }
 0x564   :  { %v354_v51 = vpop.f32.mrf.mxu2 }
 0x565   :  { %v365_v52 = vadd.f32 %v363_v50, %v353_v47  ;;  %v355_v53 = vadd.f32 %v592_v44, %v354_v51 }
 0x567   :  { %v360_v54 = vmul.f32 0.044715, %v355_v53  ;;  %v367_v55 = vmul.f32 0.7978846, %v365_v52  ;;  %v358_v1 = vmul.f32 0.5, %v355_v53 }
 0x569   :  { %v362_v56 = vmul.f32 %v360_v54, %v355_v53  ;;  %607 = vtanh.f32 %v367_v55 }
 0x56b   :  { %v364_v57 = vmul.f32 %v362_v56, %v355_v53 }
 0x56d   :  { %v366_v58 = vadd.f32 %v364_v57, %v355_v53  ;;  %v479_v53 = vld [vmem:[#allocation2] sm:$0xff] }
 0x56f   :  { %v368_v59 = vmul.f32 0.7978846, %v366_v58  ;;  %v608_v60 = vpop.eup %607 }
 0x570   :  { %v371_v61 = vadd.f32 1.0, %v608_v60 }
 0x571   :  { %609 = vtanh.f32 %v368_v59 }
 0x572   :  { %v373_v3 = vmul.f32 %v371_v61, %v357_v0 }
 0x577   :  { %v610_v63 = vpop.eup %609 }
 0x578   :  { %v372_v2 = vadd.f32 1.0, %v610_v63 }
 0x57a   :  { %v374_v4 = vmul.f32 %v372_v2, %v358_v1 }
 0x57c   :  { %v375_v5 = vpack.c.bf16 %v374_v4, %v373_v3 }
 0x57e   :  { %569 = vmatmul.msk.bf16.vlgmr.msrb.gmra.mxu0 %vm409_vm9, %v375_v5 }
 0x5fb   :  { %v422_v6 = vpop.f32.mrf.mxu0 }
 0x5fc   :  { %v423_v11 = vadd.f32 %v422_v6, %v384_v7 }
 0x5fe   :  { %v427_v13 = vadd.f32 %v423_v11, %v317_v37 }
 0x600   :  { %v429_v14 = vsel %vm132_vm0, %v427_v13, 0.0 }
 0x603   :  { %v424_v8 = vpop.f32.mrf.mxu0 }
 0x604   :  { %v425_v9 = vadd.f32 %v424_v8, %v384_v7 }
 0x606   :  { %v428_v10 = vadd.f32 %v425_v9, %v318_v38 }
 0x608   :  { %v432_v12 = vsel %vm132_vm0, %v428_v10, 0.0 }
 0x609   :  { %433 = vadd.xlane.f32.xlu1 %v432_v12 }
 0x611   :  { %430 = vadd.xlane.f32.xlu1 %v429_v14 }
 0x67c   :  { %v434_v15 = vpop.xlane.xlu1 %433 }
 0x67d   :  { %v436_v16 = vmul.f32 %v434_v15, %v895_v62 }
 0x67f   :  { %v438_v17 = vsub.f32 %v428_v10, %v436_v16 }
 0x681   :  { %v440_v18 = vmul.f32 %v438_v17, %v438_v17 }
 0x683   :  { %v444_v19 = vsel %vm132_vm0, %v440_v18, 0.0 }
 0x684   :  { %445 = vadd.xlane.f32.xlu0 %v444_v19  ;;  %v431_v20 = vpop.xlane.xlu1 %430 }
 0x685   :  { %v435_v21 = vmul.f32 %v431_v20, %v895_v62 }
 0x687   :  { %v437_v22 = vsub.f32 %v427_v13, %v435_v21 }
 0x689   :  { %v439_v23 = vmul.f32 %v437_v22, %v437_v22 }
 0x68b   :  { %v441_v24 = vsel %vm132_vm0, %v439_v23, 0.0 }
 0x68c   :  { %442 = vadd.xlane.f32.xlu1 %v441_v24 }
 0x6f7   :  { %v446_v25 = vpop.xlane.xlu0 %445 }
 0x6f8   :  { %v448_v26 = vmul.f32 %v446_v25, %v895_v62 }
 0x6fa   :  { %v450_v27 = vadd.f32 1e-05, %v448_v26 }
 0x6fc   :  { %611 = vrsqrt.f32 %v450_v27  ;;  %vm467_vm11 = vweird.f32 %v450_v27 }
 0x6ff   :  { %v443_v28 = vpop.xlane.xlu1 %442 }
 0x700   :  { %v447_v29 = vmul.f32 %v443_v28, %v895_v62  ;;  %v476_v62 = vperm.slane %v888_v46, 5 }
 0x702   :  { %v612_v30 = vpop.eup %611  ;;  %v449_v31 = vadd.f32 1e-05, %v447_v29 }
 0x703   :  { %v462_v32 = vmul.f32 %v612_v30, %v450_v27  ;;  %vm468_vm10 = vweird.f32 %v612_v30 }
 0x704   :  { %613 = vrsqrt.f32 %v449_v31  ;;  %vm469_vm12 = vmor %vm467_vm11, %vm468_vm10  ;;  %vm457_vm14 = vweird.f32 %v449_v31 }
 0x705   :  { %v463_v33 = vmul.f32 %v612_v30, %v462_v32 }
 0x707   :  { %v464_v34 = vmul.f32 0.5, %v463_v33 }
 0x709   :  { %v465_v35 = vsub.f32 1.5, %v464_v34 }
 0x70a   :  { %v614_v36 = vpop.eup %613 }
 0x70b   :  { %v466_v37 = vmul.f32 %v612_v30, %v465_v35  ;;  %v452_v38 = vmul.f32 %v614_v36, %v449_v31  ;;  %vm458_vm13 = vweird.f32 %v614_v36 }
 0x70c   :  { %vm459_vm15 = vmor %vm457_vm14, %vm458_vm13 }
 0x70d   :  { %v453_v40 = vmul.f32 %v614_v36, %v452_v38  ;;  %v470_v41 = vsel %vm469_vm12, %v612_v30, %v466_v37 }
 0x70e   :  { %v472_v42 = vmul.f32 %v470_v41, %v438_v17 }
 0x70f   :  { %v454_v43 = vmul.f32 0.5, %v453_v40 }
 0x710   :  { %v475_v44 = vmul.f32 %v473_v39, %v472_v42 }
 0x711   :  { %v455_v45 = vsub.f32 1.5, %v454_v43 }
 0x712   :  { %v478_v47 = vadd.f32 %v476_v62, %v475_v44 }
 0x713   :  { %v456_v48 = vmul.f32 %v614_v36, %v455_v45 }
 0x714   :  { %497 = vmatpush.msrb.mxu1 %v478_v47 }
 0x715   :  { %v460_v49 = vsel %vm459_vm15, %v614_v36, %v456_v48 }
 0x716   :  { %v471_v50 = vmul.f32 %v460_v49, %v437_v22 }
 0x718   :  { %v474_v51 = vmul.f32 %v473_v39, %v471_v50 }
 0x71a   :  { %v477_v52 = vadd.f32 %v476_v62, %v474_v51 }
 0x71c   :  { %498 = vmatpush.msrb.mxu1 %v477_v52 }
 0x71d   :  { %570 = vmatmul.msk.f32.vlgmr.msrb.gmra.mxu1 %vm180_vm1, %v479_v53 }
 0x79a   :  { %v500_v46 = vpop.f32.mrf.mxu1 }
 0x79b   :  { %v503_v54 = vsel %vm132_vm0, %v500_v46, 0.0 }
 0x79c   :  { %504 = vst [vmem:[#allocation11] sm:$0xff] %v503_v54 }
 0x79d   :  { %515 = dma.vmem_to_hbm [thread:$0]  %s511_s12, 128, %s513_s14, [#allocation4]  }
 0x79e   :  { %765 = dma.done.wait [#allocation4], 128  }
 0x79f   :  { %766 = vsyncadd [#allocation4], 4294967168 }
 0x7a0   :  { %520 = vsyncpa [#allocation3], 1 }
 0x7a1   :  { %521 = vsyncpa [#allocation6], 1 }
 0x7a2   :  { %522 = vsyncpa [#allocation9], 1 }
 0x7a3   :  { %523 = vsyncpa [#allocation4], 1 }

</bundles_post_ra>
